<compile_context>
chip_gen: v5e
topology: v5e:2x2
jax: 0.10.0
libtpu: 0.0.40
codegen_flags: <defaults>
</compile_context>

<pallas_src>
from functools import partial

import jax
import jax.numpy as jnp
from jax.experimental import pallas as pl
from jax.experimental.pallas import tpu as pltpu


_BLOCK_BYTES_TARGET = 2 * 1024 * 1024   # per-step input block target (bytes)
_LANE_CAP_F32 = 512                     # packed input lanes per row, f32 path (3 MXU passes)
_LANE_CAP_BF16 = 1024                   # packed input lanes per row, bf16 path (1 MXU pass)


def _maxpool2x2_kernel(x_ref, sel_ref, o_ref, *, w):
    """One block: (tb, L) packed input rows -> (tb, L//4) pooled output rows.

    Lane layout of an input super-row: [row 2p | row 2p+1] for p = 0..k-1,
    each of width `w`.  After the two roll+max steps, lane (2*p*w + 2*j) holds
    the max of the 2x2 window (rows 2p,2p+1 / cols 2j,2j+1); the 0/1 selector
    compacts exactly those lanes to output lane (p*wo + j).
    """
    l_in = x_ref.shape[-1]
    x = x_ref[...]

    # Horizontal pair max (XLU roll + VPU max): m[l] = max(x[l], x[l+1]).
    m = jnp.maximum(x, pltpu.roll(x, l_in - 1, axis=1))
    # Vertical pair max: m[l] = max(m[l], m[l+w]).  Wrapped lanes are never
    # selected (selected lanes satisfy l + w < l_in), so wrap-around is harmless.
    m = jnp.maximum(m, pltpu.roll(m, l_in - w, axis=1))

    sel = sel_ref[...]                       # bf16 0/1 selector (exact)
    if m.dtype == jnp.float32:
        # Exact f32 path: one-sided split into 3 bf16 pieces (each split and
        # each partial sum is exact), accumulated in f32 -> 3 MXU passes.
        hi = m.astype(jnp.bfloat16)
        r1 = m - hi.astype(jnp.float32)
        mid = r1.astype(jnp.bfloat16)
        lo = (r1 - mid.astype(jnp.float32)).astype(jnp.bfloat16)
        out = jnp.dot(hi, sel, preferred_element_type=jnp.float32)
        out = out + jnp.dot(mid, sel, preferred_element_type=jnp.float32)
        out = out + jnp.dot(lo, sel, preferred_element_type=jnp.float32)
    else:
        # bf16 path: single MXU pass, exact (single 1.0 term, f32 accumulate).
        out = jnp.dot(m, sel, preferred_element_type=jnp.float32)

    o_ref[...] = out.astype(o_ref.dtype)


def _choose_pack(rows_total: int, wo: int, lane_cap: int) -> int:
    """Output image rows packed per super-row (must divide rows_total so the
    reshape is a free contiguous view).  Prefer output lane width k*wo that is
    a multiple of 256 (full v6e/v7x MXU output tile), then 128 (unmasked
    stores); within an alignment class prefer the smallest packed width
    (fewest selection-matmul MACs per output)."""
    best_k, best_key = 1, (-1, 0)
    max_k = max(1, lane_cap // (4 * wo))
    for k in range(1, min(rows_total, max_k) + 1):
        if rows_total % k:
            continue
        l_out = k * wo
        align = 2 if l_out % 256 == 0 else (1 if l_out % 128 == 0 else 0)
        key = (align, l_out) if align == 0 else (align, -l_out)
        if key > best_key:
            best_key, best_k = key, k
    return best_k


def _choose_row_tile(r: int, row_bytes: int) -> tuple[int, int]:
    """(rows per block, grid size).  Prefer a multiple-of-8 divisor of r (clean
    sublane tiling, no padding), ~2 MiB input blocks, and >=2 blocks when there
    are enough rows so the 'parallel' grid axis can use both v7x TensorCores."""
    cap = max(1, _BLOCK_BYTES_TARGET // row_bytes)
    if r >= 16:
        cap = min(cap, r // 2)           # keep at least 2 blocks for megacore
    cap = min(cap, r)
    t = (cap // 8) * 8
    while t >= 8:
        if r % t == 0:
            return t, r // t
        t -= 8
    if r * row_bytes <= 8 * _BLOCK_BYTES_TARGET:
        return r, 1                      # single full block (block dim == array dim)
    # Last resort (large prime-ish r): ragged final block.  Pallas only writes
    # the in-range output rows; the garbage rows it reads feed only those.
    t = max(8, (cap // 8) * 8)
    return t, pl.cdiv(r, t)


def maxpool2x2_pallas(x_nchw: jax.Array) -> jax.Array:
    """nn.MaxPool2d(kernel_size=2, stride=2) on an NCHW input."""
    n, c, h, w = x_nchw.shape
    ho, wo = h // 2, w // 2
    if ho == 0 or wo == 0:
        raise ValueError("spatial dims must be >= 2 for MaxPool2d(2)")
    if wo > 1024:
        # TODO(synk): within-row block-diagonal selector chunking for very wide rows.
        raise NotImplementedError("maxpool2x2_pallas currently supports W <= 2048")
    h2, w2 = 2 * ho, 2 * wo
    if (h2, w2) != (h, w):
        # PyTorch floors: drop trailing row/col (this crop is the only case
        # that materializes a copy; even shapes stay zero-copy).
        x_nchw = x_nchw[:, :, :h2, :w2]

    orig_dtype = x_nchw.dtype
    if orig_dtype not in (jnp.float32, jnp.bfloat16):
        x_nchw = x_nchw.astype(jnp.float32)   # TODO(synk): int exactness only < 2**24
    dtype = x_nchw.dtype
    itemsize = jnp.dtype(dtype).itemsize
    lane_cap = _LANE_CAP_BF16 if dtype == jnp.bfloat16 else _LANE_CAP_F32

    rows_total = n * c * ho                   # pooled image rows
    k = _choose_pack(rows_total, wo, lane_cap)
    r = rows_total // k                       # super-rows
    l_in, l_out = 4 * k * wo, k * wo          # packed input / output lane widths

    # Free contiguous views: k row-pairs per super-row in, k pooled rows out.
    x2 = x_nchw.reshape(r, l_in)

    # bf16 0/1 selector: column q picks input lane 2*(q//wo)*w2 + 2*(q%wo).
    q = jnp.arange(l_out, dtype=jnp.int32)
    in_lane = 2 * (q // wo) * w2 + 2 * (q % wo)
    sel = (jnp.arange(l_in, dtype=jnp.int32)[:, None] == in_lane[None, :]
           ).astype(jnp.bfloat16)

    tb, grid0 = _choose_row_tile(r, l_in * itemsize)

    out = pl.pallas_call(
        partial(_maxpool2x2_kernel, w=w2),
        out_shape=jax.ShapeDtypeStruct((r, l_out), dtype),
        grid_spec=pltpu.PrefetchScalarGridSpec(
            num_scalar_prefetch=0,
            grid=(grid0,),
            in_specs=[
                pl.BlockSpec((tb, l_in), lambda i: (i, 0)),
                # Constant block index -> fetched once, stays VMEM-resident
                # (<= ~0.5 MiB bf16, so its pipeline buffers are negligible).
                pl.BlockSpec((l_in, l_out), lambda i: (0, 0)),
            ],
            out_specs=pl.BlockSpec((tb, l_out), lambda i: (i, 0)),
        ),
        compiler_params=pltpu.CompilerParams(
            # Row blocks are independent -> shard across v7x's two TensorCores.
            dimension_semantics=("parallel",),
            # Explicit budget (review fix #5): worst case is ~2 MiB input blocks
            # double-buffered + f32-split intermediates + selector << 32 MiB,
            # which every generation (incl. v5e's 16 MiB default) can scope.
            vmem_limit_bytes=32 * 1024 * 1024,
        ),
    )(x2, sel)

    y = out.reshape(n, c, ho, wo)
    if y.dtype != orig_dtype:
        y = y.astype(orig_dtype)
    return y


if __name__ == "__main__":
    key = jax.random.PRNGKey(0)
    batch, channels, spatial = 2, 4, 16

    x = jax.random.normal(key, (batch, channels, spatial, spatial), dtype=jnp.float32)
    y = maxpool2x2_pallas(x)
    jax.block_until_ready(y)
    y_ref = x.reshape(batch, channels, spatial // 2, 2, spatial // 2, 2).max(axis=(3, 5))
    assert y.shape == y_ref.shape
    assert jnp.allclose(y, y_ref, atol=1e-6, rtol=1e-6)

    # Second shape exercises the multi-block 'parallel' grid path.
    x2 = jax.random.normal(jax.random.PRNGKey(1), (2, 4, 32, 32), dtype=jnp.float32)
    y2 = maxpool2x2_pallas(x2)
    jax.block_until_ready(y2)
    y2_ref = x2.reshape(2, 4, 16, 2, 16, 2).max(axis=(3, 5))
    assert jnp.allclose(y2, y2_ref, atol=1e-6, rtol=1e-6)

    print("KERNEL_OK")
</pallas_src>

<mosaic_0001>
module attributes {stable_mosaic.version = 11 : i64} {
  func.func @_maxpool2x2_kernel(%arg0: i32, %arg1: memref<4x512xf32, #tpu.memory_space<vmem>>, %arg2: memref<512x128xbf16, #tpu.memory_space<vmem>>, %arg3: memref<4x128xf32, #tpu.memory_space<vmem>>) attributes {dimension_semantics = [#tpu.dimension_semantics<parallel>], iteration_bounds = array<i64: 1>, scalar_prefetch = 0 : i64, scratch_operands = 0 : i64, tpu.core_type = #tpu.core_type<tc>, window_params = [{transform_indices = @transform_0, window_bounds = array<i64: 4, 512>}, {pipeline_mode = #tpu.pipeline_mode<synchronous>, transform_indices = @transform_1, window_bounds = array<i64: 512, 128>}, {transform_indices = @transform_2, window_bounds = array<i64: 4, 128>}]} {
    %c0 = arith.constant 0 : index
    %c0_0 = arith.constant 0 : index
    %0 = vector.load %arg1[%c0, %c0_0] : memref<4x512xf32, #tpu.memory_space<vmem>>, vector<4x512xf32>
    %c511_i32 = arith.constant 511 : i32
    %1 = tpu.dynamic_rotate %0 by %c511_i32 dim 1 : vector<4x512xf32>, i32 -> vector<4x512xf32>
    %2 = arith.maximumf %0, %1 : vector<4x512xf32>
    %c496_i32 = arith.constant 496 : i32
    %3 = tpu.dynamic_rotate %2 by %c496_i32 dim 1 : vector<4x512xf32>, i32 -> vector<4x512xf32>
    %4 = arith.maximumf %2, %3 : vector<4x512xf32>
    %c0_1 = arith.constant 0 : index
    %c0_2 = arith.constant 0 : index
    %5 = vector.load %arg2[%c0_1, %c0_2] : memref<512x128xbf16, #tpu.memory_space<vmem>>, vector<512x128xbf16>
    %6 = arith.truncf %4 : vector<4x512xf32> to vector<4x512xbf16>
    %7 = arith.extf %6 : vector<4x512xbf16> to vector<4x512xf32>
    %8 = arith.subf %4, %7 : vector<4x512xf32>
    %9 = arith.truncf %8 : vector<4x512xf32> to vector<4x512xbf16>
    %10 = arith.extf %9 : vector<4x512xbf16> to vector<4x512xf32>
    %11 = arith.subf %8, %10 : vector<4x512xf32>
    %12 = arith.truncf %11 : vector<4x512xf32> to vector<4x512xbf16>
    %cst = arith.constant dense<0.000000e+00> : vector<4x128xf32>
    %13 = tpu.matmul %6, %5, %cst {dimension_numbers = #tpu.dot_dimension_numbers<[1], [0], [0], [1], [0, 0, 1, 1], [], []>} : vector<4x512xbf16>, vector<512x128xbf16>, vector<4x128xf32> -> vector<4x128xf32>
    %cst_3 = arith.constant dense<0.000000e+00> : vector<4x128xf32>
    %14 = tpu.matmul %9, %5, %cst_3 {dimension_numbers = #tpu.dot_dimension_numbers<[1], [0], [0], [1], [0, 0, 1, 1], [], []>} : vector<4x512xbf16>, vector<512x128xbf16>, vector<4x128xf32> -> vector<4x128xf32>
    %15 = arith.addf %13, %14 : vector<4x128xf32>
    %cst_4 = arith.constant dense<0.000000e+00> : vector<4x128xf32>
    %16 = tpu.matmul %12, %5, %cst_4 {dimension_numbers = #tpu.dot_dimension_numbers<[1], [0], [0], [1], [0, 0, 1, 1], [], []>} : vector<4x512xbf16>, vector<512x128xbf16>, vector<4x128xf32> -> vector<4x128xf32>
    %17 = arith.addf %15, %16 : vector<4x128xf32>
    %c0_5 = arith.constant 0 : index
    %c0_6 = arith.constant 0 : index
    %18 = vector.load %arg3[%c0_5, %c0_6] : memref<4x128xf32, #tpu.memory_space<vmem>>, vector<4x128xf32>
    tpu.vector_store %arg3[%c0_5, %c0_6], %17 {strides = array<i32>} : memref<4x128xf32, #tpu.memory_space<vmem>>, vector<4x128xf32>,
    return
  }
  func.func @transform_0(%arg0: i32) -> (i32, i32) {
    %c0_i32 = arith.constant 0 : i32
    %c0_i32_0 = arith.constant 0 : i32
    return %arg0, %c0_i32 : i32, i32
  }
  func.func @transform_1(%arg0: i32) -> (i32, i32) {
    %c0_i32 = arith.constant 0 : i32
    %c0_i32_0 = arith.constant 0 : i32
    %c0_i32_1 = arith.constant 0 : i32
    return %c0_i32, %c0_i32_0 : i32, i32
  }
  func.func @transform_2(%arg0: i32) -> (i32, i32) {
    %c0_i32 = arith.constant 0 : i32
    %c0_i32_0 = arith.constant 0 : i32
    return %arg0, %c0_i32 : i32, i32
  }
}

</mosaic_0001>

<bundles_post_ra>
// kernel: tpu_custom_call.1
= control target key start
LH: loop header
LB: loop body
LE: loop exit
PB: predicated region body
PF: predicated region fallthrough
CT: control target
= control target key end

     0   :  { %7 = vsyncpa [#allocation3], 0  ;;  %s1138_s0 = inlined_call_operand.hbm [shape: f32[4,512], index: 0, kind: input, shape index: {}]   ;;  %s1139_s1 = inlined_call_operand.hbm [shape: bf16[512,128], index: 1, kind: input, shape index: {}]   ;;  %s1140_s2 = inlined_call_operand.hbm [shape: f32[4,128], index: 2, kind: output, shape index: {}]  }
   0x1   :  { %8 = vsyncpa [#allocation6], 0 }
   0x2   :  { %9 = vsyncpa [#allocation4], 0  ;;  %s15_s11 = sshll.u32 %s1138_s0, 4  ;;  %s907_s12 = smov [#allocation2]   ;;  %s16_s11 = int_to_ptr.hbm [resolvable:$true] %s15_s11 }
   0x3   :  { %s17_s13 = sshll.u32 %s907_s12, 4  ;;  %s25_s16 = sshll.u32 %s1139_s1, 4  ;;  %s18_s13 = int_to_ptr.vmem [resolvable:$true] %s17_s13  ;;  %s26_s16 = int_to_ptr.hbm [resolvable:$true] %s25_s16 }
   0x4   :  { %20 = dma.hbm_to_vmem [thread:$0]  %s16_s11, 256, %s18_s13, [#allocation3]  }
   0x5   :  { %s908_s17 = smov [#allocation5]   ;;  %s909_s19 = smov 64  }
   0x6   :  { %s27_s18 = sshll.u32 %s908_s17, 4  ;;  %s910_s20 = smov 4   ;;  %s28_s18 = int_to_ptr.vmem [resolvable:$true] %s27_s18 }
   0x7   :  { %33 = dma.hbm_to_vmem [thread:$0]  %s26_s16, 4096, %s28_s18, [#allocation6], %s909_s19, %s909_s19, %s910_s20  }
   0x8   :  { %901 = dma.done.wait [#allocation3], 256  }
   0x9   :  { %902 = vsyncadd [#allocation3], 4294967040 }
   0xa   :  { %903 = dma.done.wait [#allocation6], 4096  }
   0xb   :  { %904 = vsyncadd [#allocation6], 4294963200  ;;  %v43_v0 = vld [vmem:[#allocation2 + $0x8] sm:$0xff]  ;;  %v42_v1 = vld [vmem:[#allocation2] sm:$0xff]  ;;  %s911_s0 = smov 127   ;;  %v65_v6 = vlaneseq  ;;  %vm78_vm1 = vcmask 1043456  }
   0xc   :  { %48 = vst [vmem:[#allocation1 + $0x10] ss:$2 sm:$0xff] %v43_v0  ;;  %s912_s1 = smov 112   ;;  %v946_v26 = vld [vmem:[#allocation5 + $0xb8] sm:$0xff]  ;;  %v956_v30 = vld [vmem:[#allocation5 + $0xb0] sm:$0xff]  ;;  %v970_v34 = vld [vmem:[#allocation5 + $0xa8] sm:$0xff] }
   0xd   :  { %46 = vst [vmem:[#allocation1] ss:$2 sm:$0xff] %v42_v1  ;;  %v935_v9 = vand.u32 127, %v65_v6  ;;  %v948_v27 = vld [vmem:[#allocation5 + $0xf8] sm:$0xff]  ;;  %498 = vmatpush.bf16.msra.mxu2 %v946_v26  ;;  %v958_v31 = vld [vmem:[#allocation5 + $0xf0] sm:$0xff]  ;;  %v972_v35 = vld [vmem:[#allocation5 + $0xe8] sm:$0xff] }
   0xe   :  { %v950_v28 = vld [vmem:[#allocation5 + $0x38] sm:$0xff]  ;;  %511 = vmatpush.bf16.msra.mxu3 %v948_v27  ;;  %v964_v32 = vld [vmem:[#allocation5 + $0x30] sm:$0xff]  ;;  %v974_v36 = vld [vmem:[#allocation5 + $0x28] sm:$0xff]  ;;  %s913_s21 = smov [#allocation7]   ;;  %s651_s25 = sshll.u32 %s1140_s2, 4  ;;  %s652_s25 = int_to_ptr.hbm [resolvable:$true] %s651_s25 }
   0xf   :  { %vm67_vm0 = vcmp.lt.s32.totalorder %v935_v9, 127  ;;  %v952_v29 = vld [vmem:[#allocation5 + $0x78] sm:$0xff]  ;;  %472 = vmatpush.bf16.msra.mxu0 %v950_v28  ;;  %v966_v33 = vld [vmem:[#allocation5 + $0x70] sm:$0xff]  ;;  %v976_v37 = vld [vmem:[#allocation5 + $0x68] sm:$0xff]  ;;  %vm106_vm2 = vcmp.lt.s32.totalorder %v935_v9, 112  ;;  %s649_s22 = sshll.u32 %s913_s21, 4  ;;  %s650_s22 = int_to_ptr.vmem [resolvable:$true] %s649_s22 }
  0x10   :  { %485 = vmatpush.bf16.msra.mxu1 %v952_v29  ;;  %v980_v38 = vld [vmem:[#allocation5 + $0xa0] sm:$0xff]  ;;  %v992_v42 = vld [vmem:[#allocation5 + $0x98] sm:$0xff]  ;;  %v1004_v46 = vld [vmem:[#allocation5 + $0x90] sm:$0xff] }
  0x11   :  { %499 = vmatpush.bf16.msra.mxu2 %v956_v30  ;;  %v982_v39 = vld [vmem:[#allocation5 + $0xe0] sm:$0xff]  ;;  %v994_v43 = vld [vmem:[#allocation5 + $0xd8] sm:$0xff]  ;;  %v1006_v47 = vld [vmem:[#allocation5 + $0xd0] sm:$0xff] }
  0x12   :  { %512 = vmatpush.bf16.msra.mxu3 %v958_v31  ;;  %v986_v40 = vld [vmem:[#allocation5 + $0x20] sm:$0xff]  ;;  %v998_v44 = vld [vmem:[#allocation5 + $0x18] sm:$0xff]  ;;  %v1012_v48 = vld [vmem:[#allocation5 + $0x10] sm:$0xff] }
  0x13   :  { %v51_v2 = vld.sshfl [vmem:[#allocation1 + $0x10] sm:$0xff pattern:$0x75316420]  ;;  %v52_v4 = vld.sshfl [vmem:[#allocation1 + $0x18] sm:$0xff pattern:$0x75316420]  ;;  %473 = vmatpush.bf16.msra.mxu0 %v964_v32 }
  0x14   :  { %61 = vrot.lane.b32.xlu1 %v51_v2, %s911_s0  ;;  %v49_v3 = vld.sshfl [vmem:[#allocation1] sm:$0xff pattern:$0x75316420]  ;;  %v50_v5 = vld.sshfl [vmem:[#allocation1 + $0x8] sm:$0xff pattern:$0x75316420]  ;;  %486 = vmatpush.bf16.msra.mxu1 %v966_v33 }
  0x15   :  { %57 = vrot.lane.b32.xlu0 %v49_v3, %s911_s0  ;;  %500 = vmatpush.bf16.msra.mxu2 %v970_v34  ;;  %v988_v41 = vld [vmem:[#allocation5 + $0x60] sm:$0xff]  ;;  %v1000_v45 = vld [vmem:[#allocation5 + $0x58] sm:$0xff]  ;;  %v1014_v49 = vld [vmem:[#allocation5 + $0x50] sm:$0xff] }
  0x16   :  { %513 = vmatpush.bf16.msra.mxu3 %v972_v35  ;;  %v1018_v50 = vld [vmem:[#allocation5 + $0x88] sm:$0xff]  ;;  %v1030_v54 = vld [vmem:[#allocation5 + $0x80] sm:$0xff] }
  0x17   :  { %474 = vmatpush.bf16.msra.mxu0 %v974_v36  ;;  %v1020_v51 = vld [vmem:[#allocation5 + $0xc8] sm:$0xff]  ;;  %v1032_v55 = vld [vmem:[#allocation5 + $0xc0] sm:$0xff] }
  0x18   :  { %487 = vmatpush.bf16.msra.mxu1 %v976_v37  ;;  %v1024_v52 = vld [vmem:[#allocation5 + $0x8] sm:$0xff]  ;;  %v1036_v56 = vld [vmem:[#allocation5] sm:$0xff] }
  0x19   :  { %501 = vmatpush.bf16.msra.mxu2 %v980_v38  ;;  %v1026_v53 = vld [vmem:[#allocation5 + $0x48] sm:$0xff]  ;;  %v1038_v57 = vld [vmem:[#allocation5 + $0x40] sm:$0xff] }
  0x1a   :  { %514 = vmatpush.bf16.msra.mxu3 %v982_v39 }
  0x1b   :  { %475 = vmatpush.bf16.msra.mxu0 %v986_v40 }
  0x1c   :  { %63 = vrot.lane.b32.xlu1 %v52_v4, %s911_s0  ;;  %488 = vmatpush.bf16.msra.mxu1 %v988_v41 }
  0x1d   :  { %59 = vrot.lane.b32.xlu0 %v50_v5, %s911_s0  ;;  %502 = vmatpush.bf16.msra.mxu2 %v992_v42 }
  0x1e   :  { %515 = vmatpush.bf16.msra.mxu3 %v994_v43 }
  0x1f   :  { %476 = vmatpush.bf16.msra.mxu0 %v998_v44 }
  0x20   :  { %489 = vmatpush.bf16.msra.mxu1 %v1000_v45 }
  0x21   :  { %503 = vmatpush.bf16.msra.mxu2 %v1004_v46 }
  0x22   :  { %516 = vmatpush.bf16.msra.mxu3 %v1006_v47 }
  0x23   :  { %477 = vmatpush.bf16.msra.mxu0 %v1012_v48 }
  0x24   :  { %490 = vmatpush.bf16.msra.mxu1 %v1014_v49 }
  0x25   :  { %504 = vmatpush.bf16.msra.mxu2 %v1018_v50 }
  0x26   :  { %517 = vmatpush.bf16.msra.mxu3 %v1020_v51 }
  0x27   :  { %478 = vmatpush.bf16.msra.mxu0 %v1024_v52 }
  0x28   :  { %491 = vmatpush.bf16.msra.mxu1 %v1026_v53 }
  0x29   :  { %505 = vmatpush.bf16.msra.mxu2 %v1030_v54 }
  0x2a   :  { %518 = vmatpush.bf16.msra.mxu3 %v1032_v55 }
  0x2b   :  { %479 = vmatpush.bf16.msra.mxu0 %v1036_v56 }
  0x2c   :  { %492 = vmatpush.bf16.msra.mxu1 %v1038_v57 }
  0x2d   :  { %564 = vmatpush.bf16.msrb.mxu2 %v946_v26 }
  0x2e   :  { %577 = vmatpush.bf16.msrb.mxu3 %v948_v27 }
  0x2f   :  { %538 = vmatpush.bf16.msrb.mxu0 %v950_v28 }
  0x30   :  { %551 = vmatpush.bf16.msrb.mxu1 %v952_v29 }
  0x31   :  { %565 = vmatpush.bf16.msrb.mxu2 %v956_v30 }
  0x32   :  { %578 = vmatpush.bf16.msrb.mxu3 %v958_v31 }
  0x33   :  { %539 = vmatpush.bf16.msrb.mxu0 %v964_v32 }
  0x34   :  { %552 = vmatpush.bf16.msrb.mxu1 %v966_v33 }
  0x35   :  { %566 = vmatpush.bf16.msrb.mxu2 %v970_v34 }
  0x36   :  { %579 = vmatpush.bf16.msrb.mxu3 %v972_v35 }
  0x37   :  { %540 = vmatpush.bf16.msrb.mxu0 %v974_v36 }
  0x38   :  { %553 = vmatpush.bf16.msrb.mxu1 %v976_v37 }
  0x39   :  { %567 = vmatpush.bf16.msrb.mxu2 %v980_v38 }
  0x3a   :  { %580 = vmatpush.bf16.msrb.mxu3 %v982_v39 }
  0x3b   :  { %541 = vmatpush.bf16.msrb.mxu0 %v986_v40 }
  0x3c   :  { %554 = vmatpush.bf16.msrb.mxu1 %v988_v41 }
  0x3d   :  { %568 = vmatpush.bf16.msrb.mxu2 %v992_v42 }
  0x3e   :  { %581 = vmatpush.bf16.msrb.mxu3 %v994_v43 }
  0x3f   :  { %542 = vmatpush.bf16.msrb.mxu0 %v998_v44 }
  0x40   :  { %555 = vmatpush.bf16.msrb.mxu1 %v1000_v45 }
  0x41   :  { %569 = vmatpush.bf16.msrb.mxu2 %v1004_v46 }
  0x42   :  { %582 = vmatpush.bf16.msrb.mxu3 %v1006_v47 }
  0x43   :  { %543 = vmatpush.bf16.msrb.mxu0 %v1012_v48 }
  0x44   :  { %556 = vmatpush.bf16.msrb.mxu1 %v1014_v49 }
  0x45   :  { %570 = vmatpush.bf16.msrb.mxu2 %v1018_v50 }
  0x46   :  { %583 = vmatpush.bf16.msrb.mxu3 %v1020_v51 }
  0x47   :  { %544 = vmatpush.bf16.msrb.mxu0 %v1024_v52 }
  0x48   :  { %557 = vmatpush.bf16.msrb.mxu1 %v1026_v53 }
  0x49   :  { %571 = vmatpush.bf16.msrb.mxu2 %v1030_v54 }
  0x4a   :  { %584 = vmatpush.bf16.msrb.mxu3 %v1032_v55 }
  0x4b   :  { %545 = vmatpush.bf16.msrb.mxu0 %v1036_v56 }
  0x4c   :  { %558 = vmatpush.bf16.msrb.mxu1 %v1038_v57 }
  0x86   :  { %v62_v7 = vpop.permute.xlu1 %61 }
  0x87   :  { %v58_v8 = vpop.permute.xlu0 %57 }
  0x8e   :  { %v64_v10 = vpop.permute.xlu1 %63 }
  0x8f   :  { %v71_v11 = vsel %vm67_vm0, %v64_v10, %v58_v8  ;;  %v60_v12 = vpop.permute.xlu0 %59  ;;  %v68_v15 = vsel %vm67_vm0, %v62_v7, %v64_v10 }
  0x90   :  { %v77_v13 = vrot.slane %v71_v11, 4  ;;  %v69_v14 = vsel %vm67_vm0, %v60_v12, %v62_v7  ;;  %v70_v18 = vsel %vm67_vm0, %v58_v8, %v60_v12 }
  0x91   :  { %v76_v16 = vrot.slane %v69_v14, 4 }
  0x92   :  { %v80_v17 = vsel %vm78_vm1, %v68_v15, %v77_v13 }
  0x93   :  { %v939_v19 = vmax.f32 %v43_v0, %v80_v17  ;;  %v79_v20 = vsel %vm78_vm1, %v70_v18, %v76_v16 }
  0x94   :  { %v942_v21 = vmax.f32 %v42_v1, %v79_v20 }
  0x95   :  { %89 = vst [vmem:[#allocation1 + $0x10] ss:$2 sm:$0xff] %v939_v19 }
  0x96   :  { %87 = vst [vmem:[#allocation1] ss:$2 sm:$0xff] %v942_v21 }
  0x9c   :  { %v92_v22 = vld.sshfl [vmem:[#allocation1 + $0x10] sm:$0xff pattern:$0x75316420]  ;;  %v93_v25 = vld.sshfl [vmem:[#allocation1 + $0x18] sm:$0xff pattern:$0x75316420] }
  0x9d   :  { %102 = vrot.lane.b32.xlu0 %v92_v22, %s912_s1  ;;  %v91_v23 = vld.sshfl [vmem:[#allocation1 + $0x8] sm:$0xff pattern:$0x75316420]  ;;  %v90_v24 = vld.sshfl [vmem:[#allocation1] sm:$0xff pattern:$0x75316420] }
  0x9e   :  { %100 = vrot.lane.b32.xlu1 %v91_v23, %s912_s1  ;;  %98 = vrot.lane.b32.xlu2 %v90_v24, %s912_s1 }
  0xa6   :  { %104 = vrot.lane.b32.xlu2 %v93_v25, %s912_s1 }
  0xf8   :  { %v99_v58 = vpop.permute.xlu2 %98 }
 0x100   :  { %v105_v59 = vpop.permute.xlu2 %104 }
 0x101   :  { %v110_v60 = vsel %vm106_vm2, %v105_v59, %v99_v58 }
 0x102   :  { %v116_v61 = vrot.slane %v110_v60, 4 }
 0x10f   :  { %v103_v62 = vpop.permute.xlu0 %102 }
 0x110   :  { %v101_v63 = vpop.permute.xlu1 %100  ;;  %v107_v0 = vsel %vm106_vm2, %v103_v62, %v105_v59 }
 0x111   :  { %v108_v1 = vsel %vm106_vm2, %v101_v63, %v103_v62  ;;  %v118_v2 = vsel %vm78_vm1, %v107_v0, %v116_v61  ;;  %v109_v5 = vsel %vm106_vm2, %v99_v58, %v101_v63 }
 0x112   :  { %v115_v3 = vrot.slane %v108_v1, 4  ;;  %v122_v4 = vmax.f32 %v939_v19, %v118_v2 }
 0x114   :  { %v117_v6 = vsel %vm78_vm1, %v109_v5, %v115_v3  ;;  %191 = vst [vmem:[#allocation1 + $0x10] ss:$2 sm:$0xff] %v122_v4 }
 0x115   :  { %v121_v7 = vmax.f32 %v942_v21, %v117_v6 }
 0x117   :  { %189 = vst [vmem:[#allocation1] ss:$2 sm:$0xff] %v121_v7 }
 0x11b   :  { %v194_v8 = vld.sshfl [vmem:[#allocation1 + $0x10] sm:$0xff pattern:$0x75316420]  ;;  %v195_v10 = vld.sshfl [vmem:[#allocation1 + $0x18] sm:$0xff pattern:$0x75316420] }
 0x11c   :  { %v1087_v11 = vpack.c.bf16 %v195_v10, %v194_v8 }
 0x11e   :  { %v192_v9 = vld.sshfl [vmem:[#allocation1] sm:$0xff pattern:$0x75316420]  ;;  %v193_v12 = vld.sshfl [vmem:[#allocation1 + $0x8] sm:$0xff pattern:$0x75316420]  ;;  %v205_v13 = vunpack.c.h.bf16 %v1087_v11  ;;  %v204_v15 = vunpack.c.l.bf16 %v1087_v11 }
 0x11f   :  { %v1090_v14 = vpack.c.bf16 %v193_v12, %v192_v9 }
 0x120   :  { %v211_v16 = vrot.slane %v205_v13, 4 }
 0x121   :  { %v203_v17 = vunpack.c.h.bf16 %v1090_v14  ;;  %v202_v19 = vunpack.c.l.bf16 %v1090_v14 }
 0x122   :  { %v213_v18 = vsel %vm78_vm1, %v204_v15, %v211_v16 }
 0x123   :  { %v210_v20 = vrot.slane %v203_v17, 4  ;;  %v217_v21 = vsub.f32 %v122_v4, %v213_v18 }
 0x125   :  { %v212_v22 = vsel %vm78_vm1, %v202_v19, %v210_v20  ;;  %222 = vst [vmem:[#allocation1 + $0x10] ss:$2 sm:$0xff] %v217_v21 }
 0x126   :  { %v216_v23 = vsub.f32 %v121_v7, %v212_v22 }
 0x128   :  { %220 = vst [vmem:[#allocation1] ss:$2 sm:$0xff] %v216_v23 }
 0x12c   :  { %v225_v24 = vld.sshfl [vmem:[#allocation1 + $0x10] sm:$0xff pattern:$0x75316420]  ;;  %v226_v25 = vld.sshfl [vmem:[#allocation1 + $0x18] sm:$0xff pattern:$0x75316420] }
 0x12d   :  { %v232_v58 = vpack.c.bf16 %v226_v25, %v225_v24 }
 0x12f   :  { %v236_v59 = vunpack.c.h.bf16 %v232_v58  ;;  %v270_v60 = vunpack.c.l.b16 %v232_v58  ;;  %v271_v61 = vunpack.c.h.b16 %v232_v58  ;;  %v223_v62 = vld.sshfl [vmem:[#allocation1] sm:$0xff pattern:$0x75316420]  ;;  %v224_v63 = vld.sshfl [vmem:[#allocation1 + $0x8] sm:$0xff pattern:$0x75316420]  ;;  %v235_v1 = vunpack.c.l.bf16 %v232_v58 }
 0x130   :  { %v231_v0 = vpack.c.bf16 %v224_v63, %v223_v62 }
 0x131   :  { %v242_v2 = vrot.slane %v236_v59, 4  ;;  %v274_v3 = vpack.c.b16 %v270_v60, %v270_v60  ;;  %v275_v5 = vpack.c.b16 %v271_v61, %v271_v61 }
 0x132   :  { %v234_v6 = vunpack.c.h.bf16 %v231_v0  ;;  %v268_v4 = vunpack.c.l.b16 %v231_v0  ;;  %v269_v8 = vunpack.c.h.b16 %v231_v0  ;;  %v233_v7 = vunpack.c.l.bf16 %v231_v0 }
 0x133   :  { %v244_v10 = vsel %vm78_vm1, %v235_v1, %v242_v2  ;;  %506 = vmatmul.bf16.vlgmr.msra.gmra.mxu2 %v274_v3  ;;  %519 = vmatmul.bf16.vlgmr.msra.gmra.mxu3 %v275_v5 }
 0x134   :  { %v248_v9 = vsub.f32 %v217_v21, %v244_v10  ;;  %616 = vmatpush.bf16.msra.mxu2 %v946_v26  ;;  %629 = vmatpush.bf16.msra.mxu3 %v948_v27  ;;  %v241_v12 = vrot.slane %v234_v6, 4  ;;  %v272_v13 = vpack.c.b16 %v268_v4, %v268_v4  ;;  %v273_v15 = vpack.c.b16 %v269_v8, %v269_v8 }
 0x135   :  { %v528_v26 = vunpack.c.l.b16 %v1087_v11  ;;  %v529_v27 = vunpack.c.h.b16 %v1087_v11 }
 0x136   :  { %253 = vst [vmem:[#allocation1 + $0x10] ss:$2 sm:$0xff] %v248_v9  ;;  %v243_v16 = vsel %vm78_vm1, %v233_v7, %v241_v12  ;;  %480 = vmatmul.bf16.vlgmr.msra.gmra.mxu0 %v272_v13  ;;  %493 = vmatmul.bf16.vlgmr.msra.gmra.mxu1 %v273_v15 }
 0x137   :  { %v247_v17 = vsub.f32 %v216_v23, %v243_v16  ;;  %590 = vmatpush.bf16.msra.mxu0 %v950_v28  ;;  %603 = vmatpush.bf16.msra.mxu1 %v952_v29  ;;  %v526_v28 = vunpack.c.l.b16 %v1090_v14  ;;  %v527_v29 = vunpack.c.h.b16 %v1090_v14 }
 0x138   :  { %617 = vmatpush.bf16.msra.mxu2 %v956_v30  ;;  %630 = vmatpush.bf16.msra.mxu3 %v958_v31  ;;  %v532_v30 = vpack.c.b16 %v528_v26, %v528_v26  ;;  %v533_v31 = vpack.c.b16 %v529_v27, %v529_v27 }
 0x139   :  { %251 = vst [vmem:[#allocation1] ss:$2 sm:$0xff] %v247_v17 }
 0x13b   :  { %591 = vmatpush.bf16.msra.mxu0 %v964_v32  ;;  %604 = vmatpush.bf16.msra.mxu1 %v966_v33  ;;  %v530_v32 = vpack.c.b16 %v526_v28, %v526_v28  ;;  %v531_v33 = vpack.c.b16 %v527_v29, %v527_v29 }
 0x13c   :  { %618 = vmatpush.bf16.msra.mxu2 %v970_v34  ;;  %631 = vmatpush.bf16.msra.mxu3 %v972_v35 }
 0x13d   :  { %v256_v34 = vld.sshfl [vmem:[#allocation1 + $0x10] sm:$0xff pattern:$0x75316420]  ;;  %v257_v35 = vld.sshfl [vmem:[#allocation1 + $0x18] sm:$0xff pattern:$0x75316420] }
 0x13f   :  { %592 = vmatpush.bf16.msra.mxu0 %v974_v36  ;;  %605 = vmatpush.bf16.msra.mxu1 %v976_v37 }
 0x140   :  { %619 = vmatpush.bf16.msra.mxu2 %v980_v38  ;;  %632 = vmatpush.bf16.msra.mxu3 %v982_v39  ;;  %v254_v36 = vld.sshfl [vmem:[#allocation1] sm:$0xff pattern:$0x75316420]  ;;  %v255_v37 = vld.sshfl [vmem:[#allocation1 + $0x8] sm:$0xff pattern:$0x75316420]  ;;  %v264_v38 = vpack.c.bf16 %v256_v34, %v256_v34  ;;  %v265_v39 = vpack.c.bf16 %v257_v35, %v257_v35 }
 0x143   :  { %593 = vmatpush.bf16.msra.mxu0 %v986_v40  ;;  %606 = vmatpush.bf16.msra.mxu1 %v988_v41  ;;  %v262_v40 = vpack.c.bf16 %v254_v36, %v254_v36  ;;  %v263_v41 = vpack.c.bf16 %v255_v37, %v255_v37 }
 0x144   :  { %572 = vmatmul.bf16.vlgmr.msrb.gmra.mxu2 %v532_v30  ;;  %585 = vmatmul.bf16.vlgmr.msrb.gmra.mxu3 %v533_v31 }
 0x145   :  { %620 = vmatpush.bf16.msra.mxu2 %v992_v42  ;;  %633 = vmatpush.bf16.msra.mxu3 %v994_v43 }
 0x146   :  { %546 = vmatmul.bf16.vlgmr.msrb.gmra.mxu0 %v530_v32  ;;  %559 = vmatmul.bf16.vlgmr.msrb.gmra.mxu1 %v531_v33 }
 0x147   :  { %594 = vmatpush.bf16.msra.mxu0 %v998_v44  ;;  %607 = vmatpush.bf16.msra.mxu1 %v1000_v45 }
 0x149   :  { %621 = vmatpush.bf16.msra.mxu2 %v1004_v46  ;;  %634 = vmatpush.bf16.msra.mxu3 %v1006_v47 }
 0x14b   :  { %595 = vmatpush.bf16.msra.mxu0 %v1012_v48  ;;  %608 = vmatpush.bf16.msra.mxu1 %v1014_v49 }
 0x14d   :  { %622 = vmatpush.bf16.msra.mxu2 %v1018_v50  ;;  %635 = vmatpush.bf16.msra.mxu3 %v1020_v51 }
 0x14f   :  { %596 = vmatpush.bf16.msra.mxu0 %v1024_v52  ;;  %609 = vmatpush.bf16.msra.mxu1 %v1026_v53 }
 0x151   :  { %623 = vmatpush.bf16.msra.mxu2 %v1030_v54  ;;  %636 = vmatpush.bf16.msra.mxu3 %v1032_v55 }
 0x153   :  { %597 = vmatpush.bf16.msra.mxu0 %v1036_v56  ;;  %610 = vmatpush.bf16.msra.mxu1 %v1038_v57 }
 0x154   :  { %624 = vmatmul.bf16.vlgmr.msra.gmra.mxu2 %v264_v38  ;;  %637 = vmatmul.bf16.vlgmr.msra.gmra.mxu3 %v265_v39 }
 0x156   :  { %598 = vmatmul.bf16.vlgmr.msra.gmra.mxu0 %v262_v40  ;;  %611 = vmatmul.bf16.vlgmr.msra.gmra.mxu1 %v263_v41 }
 0x1b3   :  { %v481_v42 = vpop.f32.mrf.mxu0  ;;  %v494_v43 = vpop.f32.mrf.mxu1 }
 0x1b4   :  { %v495_v52 = vadd.f32 %v494_v43, %v481_v42 }
 0x1b6   :  { %v507_v44 = vpop.f32.mrf.mxu2  ;;  %v520_v45 = vpop.f32.mrf.mxu3 }
 0x1b7   :  { %v508_v55 = vadd.f32 %v507_v44, %v495_v52 }
 0x1b9   :  { %v521_v11 = vadd.f32 %v520_v45, %v508_v55 }
 0x1bb   :  { %v483_v46 = vpop.f32.mrf.mxu0  ;;  %v496_v47 = vpop.f32.mrf.mxu1 }
 0x1be   :  { %v509_v48 = vpop.f32.mrf.mxu2  ;;  %v522_v49 = vpop.f32.mrf.mxu3 }
 0x1c3   :  { %v547_v50 = vpop.f32.mrf.mxu0  ;;  %v560_v51 = vpop.f32.mrf.mxu1 }
 0x1c4   :  { %v548_v14 = vadd.f32 %v547_v50, %v521_v11 }
 0x1c6   :  { %v561_v20 = vadd.f32 %v560_v51, %v548_v14 }
 0x1c7   :  { %v573_v53 = vpop.f32.mrf.mxu2  ;;  %v586_v54 = vpop.f32.mrf.mxu3 }
 0x1c8   :  { %v574_v23 = vadd.f32 %v573_v53, %v561_v20 }
 0x1ca   :  { %v587_v60 = vadd.f32 %v586_v54, %v574_v23 }
 0x1cb   :  { %v549_v56 = vpop.f32.mrf.mxu0  ;;  %v562_v57 = vpop.f32.mrf.mxu1 }
 0x1cf   :  { %v575_v18 = vpop.f32.mrf.mxu2  ;;  %v588_v19 = vpop.f32.mrf.mxu3 }
 0x1d3   :  { %v599_v21 = vpop.f32.mrf.mxu0  ;;  %v612_v22 = vpop.f32.mrf.mxu1 }
 0x1d4   :  { %v613_v24 = vadd.f32 %v612_v22, %v599_v21 }
 0x1d7   :  { %v625_v25 = vpop.f32.mrf.mxu2  ;;  %v638_v58 = vpop.f32.mrf.mxu3 }
 0x1d8   :  { %v626_v59 = vadd.f32 %v625_v25, %v613_v24 }
 0x1da   :  { %v639_v61 = vadd.f32 %v638_v58, %v626_v59 }
 0x1db   :  { %v601_v62 = vpop.f32.mrf.mxu0  ;;  %v614_v63 = vpop.f32.mrf.mxu1 }
 0x1dc   :  { %v642_v0 = vadd.f32 %v639_v61, %v587_v60 }
 0x1de   :  { %643 = vst [vmem:[#allocation7] sm:$0xf] %v642_v0 }
 0x1df   :  { %v627_v1 = vpop.f32.mrf.mxu2  ;;  %v640_v2 = vpop.f32.mrf.mxu3  ;;  %654 = dma.vmem_to_hbm [thread:$0]  %s650_s22, 64, %s652_s25, [#allocation4]  }
 0x1e0   :  { %905 = dma.done.wait [#allocation4], 64  }
 0x1e1   :  { %906 = vsyncadd [#allocation4], 4294967232 }
 0x1e2   :  { %659 = vsyncpa [#allocation3], 1 }
 0x1e3   :  { %660 = vsyncpa [#allocation6], 1 }
 0x1e4   :  { %661 = vsyncpa [#allocation4], 1 }

</bundles_post_ra>
